<compile_context>
chip_gen: v5e
topology: v5e:2x2
jax: 0.10.0
libtpu: 0.0.40
codegen_flags: <defaults>
</compile_context>

<pallas_src>
import math
from functools import partial

import jax
import jax.numpy as jnp
from jax.experimental import pallas as pl
from jax.experimental.pallas import tpu as pltpu


# pl.reciprocal(approx=True) puts the softmax divide on the EUP (free slot) at the
# cost of ~1e-3 relative error vs torch.softmax.  Set False for an exact divide.
_APPROX_SOFTMAX_RECIP = True


# ----------------------------- in-kernel helpers -----------------------------

def _gelu(x):
    # TODO(synk): torch.nn.GELU defaults to the exact erf form; the tanh
    # approximation is used here (difference ~1e-3) for a guaranteed lowering.
    c = math.sqrt(2.0 / math.pi)
    return 0.5 * x * (1.0 + jnp.tanh(c * (x + 0.044715 * x * x * x)))


def _layernorm(x, gamma, beta, eps=1e-5):
    mu = jnp.mean(x, axis=-1, keepdims=True)
    var = jnp.mean((x - mu) ** 2, axis=-1, keepdims=True)
    return (x - mu) * jax.lax.rsqrt(var + eps) * gamma + beta


# --------------------------- fused encoder-stack kernel ------------------------

def bert_encoder_kernel(x_ref, bias_ref,
                        wqkv_ref, bqkv_ref, wo_ref, bo_ref,
                        ln1g_ref, ln1b_ref, w1_ref, b1_ref, w2_ref, b2_ref,
                        ln2g_ref, ln2b_ref,
                        out_ref, act_ref, *, heads):
    """Grid = (B, L): one batch element, one encoder layer per step.

    act_ref (VMEM scratch, (S, D) f32) carries the activation across the L axis.
    """
    l = pl.program_id(1)

    # Load the embedding into the resident activation buffer at the first layer.
    @pl.when(l == 0)
    def _():
        act_ref[...] = x_ref[0]

    x = act_ref[...]                               # (S, D) f32 activations
    bias = bias_ref[0]                             # (1, S) additive key mask (0 / -1e9)
    S, D = x.shape
    dh = D // heads
    scale = 1.0 / math.sqrt(dh)

    xb = x.astype(jnp.bfloat16)

    # --- fused Q/K/V projection: ONE lane-dense (S,D)@(D,3D) MXU matmul ---------
    qkv = jnp.dot(xb, wqkv_ref[0],
                  preferred_element_type=jnp.float32) + bqkv_ref[0]     # (S, 3D) f32
    # D-aligned splits (lane starts at multiples of D; multiples of 128 at BERT-base).
    q2 = qkv[:, 0 * D:1 * D].astype(jnp.bfloat16)
    k2 = qkv[:, 1 * D:2 * D].astype(jnp.bfloat16)
    v2 = qkv[:, 2 * D:3 * D].astype(jnp.bfloat16)

    # Relayout once to head-batched (H, S, dh) for the batched attention einsums
    # (static lane slices + leading-axis stack -- plain slice/concat lowering).
    def split_heads(t):
        return jnp.stack([t[:, h * dh:(h + 1) * dh] for h in range(heads)], axis=0)

    qh, kh, vh = split_heads(q2), split_heads(k2), split_heads(v2)

    # --- attention, batched over heads (no per-head matmul loop) -----------------
    s = jnp.einsum('hqd,hkd->hqk', qh, kh,
                   preferred_element_type=jnp.float32) * scale          # (H, S, S)
    s = s + bias[None, :, :]                       # == masked_fill(mask == 0, -1e9)
    s = s - jnp.max(s, axis=-1, keepdims=True)
    p = jnp.exp(s)
    denom = jnp.sum(p, axis=-1, keepdims=True)
    if _APPROX_SOFTMAX_RECIP:
        p = p * pl.reciprocal(denom, approx=True)
    else:
        p = p / denom

    ctx = jnp.einsum('hqk,hkd->hqd', p.astype(jnp.bfloat16), vh,
                     preferred_element_type=jnp.float32)                # (H, S, dh)

    # Relayout (H,S,dh) -> (S, H*dh) ONCE, then a single (S,D)@(D,D) output proj.
    ctx2 = jnp.concatenate([ctx[h] for h in range(heads)],
                           axis=-1).astype(jnp.bfloat16)                # (S, D)
    attn = jnp.dot(ctx2, wo_ref[0],
                   preferred_element_type=jnp.float32) + bo_ref[0]      # (S, D)

    # residual + layernorm (dropout is identity in eval mode)
    x1 = _layernorm(attn + x, ln1g_ref[0], ln1b_ref[0])

    # --- feed forward: two lane-dense matmuls (bf16 in, f32 accumulate) ---------
    h1 = _gelu(jnp.dot(x1.astype(jnp.bfloat16), w1_ref[0],
                       preferred_element_type=jnp.float32) + b1_ref[0])
    ff = jnp.dot(h1.astype(jnp.bfloat16), w2_ref[0],
                 preferred_element_type=jnp.float32) + b2_ref[0]

    y = _layernorm(ff + x1, ln2g_ref[0], ln2b_ref[0])

    act_ref[...] = y                               # carry to next layer (VMEM)
    out_ref[0] = y.astype(out_ref.dtype)           # HBM writeback only when b changes


def bert_encoder_stack(x, mask_bias, layer_stack, heads):
    """x: (B, S, D) f32, mask_bias: (B, 1, S) f32 additive,
    layer_stack: tuple of per-layer weights stacked along a leading L axis.
    Returns (B, S, D) f32 after all L encoder layers."""
    B, S, D = x.shape
    L = layer_stack[0].shape[0]

    in_specs = [
        pl.BlockSpec((1, S, D), lambda b, l: (b, 0, 0)),    # embedding (per batch)
        pl.BlockSpec((1, 1, S), lambda b, l: (b, 0, 0)),    # key-bias mask (per batch)
    ]
    for p in layer_stack:                                   # per-layer weight stream
        blk = (1,) + p.shape[1:]
        in_specs.append(
            pl.BlockSpec(blk, lambda b, l, _nd=len(blk) - 1: (l,) + (0,) * _nd))

    # VMEM budget from actual per-step buffers: double-buffered per-layer weights
    # (the double buffer IS the layer l+1 prefetch), activation/out/bias blocks,
    # the activation carry scratch and headroom for intermediates.  Cap at 56 MiB
    # so it fits v7x's 64 MiB with compiler scratch headroom.
    # TODO(synk): on v6e (128 MiB VMEM) this cap could be raised to ~96-100 MiB
    # to allow bigger tiles at real sizes.
    layer_bytes = sum(int(p.size) * p.dtype.itemsize for p in layer_stack) // L
    act_block_bytes = (2 * S * D + S) * 4
    inter_bytes = (S * 3 * D + heads * S * S + S * 4 * D) * 4
    need = 2 * layer_bytes + 2 * act_block_bytes + S * D * 4 + inter_bytes
    vmem_limit = int(min(max(3 * need, 32 * 1024 * 1024), 56 * 1024 * 1024))

    return pl.pallas_call(
        partial(bert_encoder_kernel, heads=heads),
        out_shape=jax.ShapeDtypeStruct((B, S, D), jnp.float32),
        grid_spec=pltpu.PrefetchScalarGridSpec(
            num_scalar_prefetch=0,
            grid=(B, L),                                    # L innermost: layer carry
            in_specs=in_specs,
            out_specs=pl.BlockSpec((1, S, D), lambda b, l: (b, 0, 0)),
            scratch_shapes=[pltpu.VMEM((S, D), jnp.float32)],   # activation carry
        ),
        compiler_params=pltpu.CompilerParams(
            dimension_semantics=("parallel", "arbitrary"),
            vmem_limit_bytes=vmem_limit),
    )(x, mask_bias, *layer_stack)


# ------------------------------ parameter init --------------------------------

def sinusoidal_pos_embedding(seq_len, d_model):
    pos = jnp.arange(seq_len, dtype=jnp.float32)[:, None]
    i = jnp.arange(d_model, dtype=jnp.float32)[None, :]
    angle = pos / jnp.power(10000.0, (2.0 * jnp.floor(i / 2.0)) / d_model)
    pe = jnp.where((jnp.arange(d_model) % 2) == 0, jnp.sin(angle), jnp.cos(angle))
    return pe.astype(jnp.float32)                 # (seq_len, d_model)


def init_bert_params(key, vocab_size, d_model, n_layers, heads, seq_len):
    assert d_model % heads == 0, "d_model must be divisible by heads"
    d_ff = 4 * d_model
    keys = jax.random.split(key, 1 + n_layers)
    tok = 0.02 * jax.random.normal(keys[0], (vocab_size, d_model), jnp.float32)
    tok = tok.at[0].set(0.0)                      # padding_idx = 0

    layers = []
    for l in range(n_layers):
        lk = jax.random.split(keys[1 + l], 6)
        sc = 1.0 / math.sqrt(d_model)
        # NOTE: weights stored in bfloat16 (f32 accumulation in-kernel); outputs will
        # not bit-match an all-f32 PyTorch reference (~1e-3 level differences).
        wq = sc * jax.random.normal(lk[0], (d_model, d_model), jnp.float32)
        wk = sc * jax.random.normal(lk[1], (d_model, d_model), jnp.float32)
        wv = sc * jax.random.normal(lk[2], (d_model, d_model), jnp.float32)
        wqkv = jnp.concatenate([wq, wk, wv], axis=-1).astype(jnp.bfloat16)  # (D, 3D)
        bqkv = jnp.zeros((1, 3 * d_model), jnp.float32)
        wo = (sc * jax.random.normal(lk[3], (d_model, d_model), jnp.float32)
              ).astype(jnp.bfloat16)                                        # (D, D)
        bo = jnp.zeros((1, d_model), jnp.float32)
        ln1_g = jnp.ones((1, d_model), jnp.float32)
        ln1_b = jnp.zeros((1, d_model), jnp.float32)
        w1 = (sc * jax.random.normal(lk[4], (d_model, d_ff), jnp.float32)
              ).astype(jnp.bfloat16)
        b1 = jnp.zeros((1, d_ff), jnp.float32)
        w2 = ((1.0 / math.sqrt(d_ff)) *
              jax.random.normal(lk[5], (d_ff, d_model), jnp.float32)
              ).astype(jnp.bfloat16)
        b2 = jnp.zeros((1, d_model), jnp.float32)
        ln2_g = jnp.ones((1, d_model), jnp.float32)
        ln2_b = jnp.zeros((1, d_model), jnp.float32)
        layers.append((wqkv, bqkv, wo, bo, ln1_g, ln1_b,
                       w1, b1, w2, b2, ln2_g, ln2_b))

    # Stack every per-layer tensor along a leading L axis so one pallas_call can
    # stream them with a (b, l) -> (l, ...) index map.
    n_tensors = len(layers[0])
    layer_stack = tuple(jnp.stack([layers[l][i] for l in range(n_layers)], axis=0)
                        for i in range(n_tensors))

    return {"token_emb": tok,
            "pos_emb": sinusoidal_pos_embedding(seq_len, d_model),
            "layer_stack": layer_stack}


# --------------------------------- forward ------------------------------------

def bert_forward(token_ids, params, heads):
    """token_ids: (B, S) int32 -> (B, S, D) float32."""
    B, S = token_ids.shape
    # BERTEmbedding: token embedding (padding_idx=0) + sinusoidal position
    # (dropout = identity in eval).  Gather done in plain JAX (data-dependent row
    # gather has no clean BlockSpec expression).
    h = (jnp.take(params["token_emb"], token_ids, axis=0)
         + params["pos_emb"][None, :S, :])
    # mask = (x > 0) over keys, as a compact (B, 1, S) additive bias instead of a
    # materialized (B, S, S) float mask.
    mask_bias = jnp.where(token_ids > 0, 0.0, -1e9).astype(jnp.float32)[:, None, :]
    return bert_encoder_stack(h, mask_bias, params["layer_stack"], heads)


# ----------------------------------- main --------------------------------------

if __name__ == "__main__":
    vocab_size, d_model, n_layers, heads, seq_len = 50, 32, 2, 4, 8
    B = 2

    key = jax.random.PRNGKey(0)
    kp, kx = jax.random.split(key)
    params = init_bert_params(kp, vocab_size, d_model, n_layers, heads, seq_len)

    token_ids = jax.random.randint(kx, (B, seq_len), 0, vocab_size, dtype=jnp.int32)
    token_ids = token_ids.at[0, -2:].set(0)       # some padding tokens exercise the mask

    out = bert_forward(token_ids, params, heads)
    out = jax.block_until_ready(out)
    assert out.shape == (B, seq_len, d_model) and out.dtype == jnp.float32
    assert bool(jnp.all(jnp.isfinite(out)))
    print("KERNEL_OK")
</pallas_src>

<mosaic_0001>
module attributes {stable_mosaic.version = 11 : i64} {
  func.func @bert_encoder_kernel(%arg0: i32, %arg1: i32, %arg2: memref<1x8x32xf32, #tpu.memory_space<vmem>>, %arg3: memref<1x1x8xf32, #tpu.memory_space<vmem>>, %arg4: memref<1x32x96xbf16, #tpu.memory_space<vmem>>, %arg5: memref<1x1x96xf32, #tpu.memory_space<vmem>>, %arg6: memref<1x32x32xbf16, #tpu.memory_space<vmem>>, %arg7: memref<1x1x32xf32, #tpu.memory_space<vmem>>, %arg8: memref<1x1x32xf32, #tpu.memory_space<vmem>>, %arg9: memref<1x1x32xf32, #tpu.memory_space<vmem>>, %arg10: memref<1x32x128xbf16, #tpu.memory_space<vmem>>, %arg11: memref<1x1x128xf32, #tpu.memory_space<vmem>>, %arg12: memref<1x128x32xbf16, #tpu.memory_space<vmem>>, %arg13: memref<1x1x32xf32, #tpu.memory_space<vmem>>, %arg14: memref<1x1x32xf32, #tpu.memory_space<vmem>>, %arg15: memref<1x1x32xf32, #tpu.memory_space<vmem>>, %arg16: memref<1x8x32xf32, #tpu.memory_space<vmem>>, %arg17: memref<8x32xf32, #tpu.memory_space<vmem>>) attributes {dimension_semantics = [#tpu.dimension_semantics<parallel>, #tpu.dimension_semantics<arbitrary>], iteration_bounds = array<i64: 2, 2>, scalar_prefetch = 0 : i64, scratch_operands = 1 : i64, tpu.core_type = #tpu.core_type<tc>, window_params = [{transform_indices = @transform_0, window_bounds = array<i64: 1, 8, 32>}, {transform_indices = @transform_1, window_bounds = array<i64: 1, 1, 8>}, {transform_indices = @transform_2, window_bounds = array<i64: 1, 32, 96>}, {transform_indices = @transform_3, window_bounds = array<i64: 1, 1, 96>}, {transform_indices = @transform_4, window_bounds = array<i64: 1, 32, 32>}, {transform_indices = @transform_5, window_bounds = array<i64: 1, 1, 32>}, {transform_indices = @transform_6, window_bounds = array<i64: 1, 1, 32>}, {transform_indices = @transform_7, window_bounds = array<i64: 1, 1, 32>}, {transform_indices = @transform_8, window_bounds = array<i64: 1, 32, 128>}, {transform_indices = @transform_9, window_bounds = array<i64: 1, 1, 128>}, {transform_indices = @transform_10, window_bounds = array<i64: 1, 128, 32>}, {transform_indices = @transform_11, window_bounds = array<i64: 1, 1, 32>}, {transform_indices = @transform_12, window_bounds = array<i64: 1, 1, 32>}, {transform_indices = @transform_13, window_bounds = array<i64: 1, 1, 32>}, {transform_indices = @transform_14, window_bounds = array<i64: 1, 8, 32>}]} {
    %c0_i32 = arith.constant 0 : i32
    %0 = arith.cmpi eq, %arg1, %c0_i32 : i32
    %1 = arith.extui %0 : i1 to i32
    %c0_i32_0 = arith.constant 0 : i32
    %2 = arith.cmpi ne, %1, %c0_i32_0 : i32
    scf.if %2 {
      %c0_68 = arith.constant 0 : index
      %c0_69 = arith.constant 0 : index
      %c0_70 = arith.constant 0 : index
      %169 = vector.load %arg2[%c0_68, %c0_69, %c0_70] : memref<1x8x32xf32, #tpu.memory_space<vmem>>, vector<1x8x32xf32>
      %170 = vector.shape_cast %169 : vector<1x8x32xf32> to vector<8x32xf32>
      %c0_71 = arith.constant 0 : index
      %c0_72 = arith.constant 0 : index
      %171 = vector.load %arg17[%c0_71, %c0_72] : memref<8x32xf32, #tpu.memory_space<vmem>>, vector<8x32xf32>
      tpu.vector_store %arg17[%c0_71, %c0_72], %170 {strides = array<i32>} : memref<8x32xf32, #tpu.memory_space<vmem>>, vector<8x32xf32>,
    } else {
    }
    %c0 = arith.constant 0 : index
    %c0_1 = arith.constant 0 : index
    %3 = vector.load %arg17[%c0, %c0_1] : memref<8x32xf32, #tpu.memory_space<vmem>>, vector<8x32xf32>
    %c0_2 = arith.constant 0 : index
    %c0_3 = arith.constant 0 : index
    %c0_4 = arith.constant 0 : index
    %4 = vector.load %arg3[%c0_2, %c0_3, %c0_4] : memref<1x1x8xf32, #tpu.memory_space<vmem>>, vector<1x1x8xf32>
    %5 = vector.shape_cast %4 : vector<1x1x8xf32> to vector<1x8xf32>
    %6 = arith.truncf %3 : vector<8x32xf32> to vector<8x32xbf16>
    %c0_5 = arith.constant 0 : index
    %c0_6 = arith.constant 0 : index
    %c0_7 = arith.constant 0 : index
    %7 = vector.load %arg4[%c0_5, %c0_6, %c0_7] : memref<1x32x96xbf16, #tpu.memory_space<vmem>>, vector<1x32x96xbf16>
    %8 = vector.shape_cast %7 : vector<1x32x96xbf16> to vector<32x96xbf16>
    %cst = arith.constant dense<0.000000e+00> : vector<8x96xf32>
    %9 = tpu.matmul %6, %8, %cst {dimension_numbers = #tpu.dot_dimension_numbers<[1], [0], [0], [1], [0, 0, 1, 1], [], []>} : vector<8x32xbf16>, vector<32x96xbf16>, vector<8x96xf32> -> vector<8x96xf32>
    %c0_8 = arith.constant 0 : index
    %c0_9 = arith.constant 0 : index
    %c0_10 = arith.constant 0 : index
    %10 = vector.load %arg5[%c0_8, %c0_9, %c0_10] : memref<1x1x96xf32, #tpu.memory_space<vmem>>, vector<1x1x96xf32>
    %11 = vector.shape_cast %10 : vector<1x1x96xf32> to vector<1x96xf32>
    %12 = vector.broadcast %11 : vector<1x96xf32> to vector<8x96xf32>
    %13 = arith.addf %9, %12 : vector<8x96xf32>
    %14 = vector.extract_strided_slice %13 {offsets = [0, 0], sizes = [8, 32], strides = [1, 1]} : vector<8x96xf32> to vector<8x32xf32>
    %15 = arith.truncf %14 : vector<8x32xf32> to vector<8x32xbf16>
    %16 = vector.extract_strided_slice %13 {offsets = [0, 32], sizes = [8, 32], strides = [1, 1]} : vector<8x96xf32> to vector<8x32xf32>
    %17 = arith.truncf %16 : vector<8x32xf32> to vector<8x32xbf16>
    %18 = vector.extract_strided_slice %13 {offsets = [0, 64], sizes = [8, 32], strides = [1, 1]} : vector<8x96xf32> to vector<8x32xf32>
    %19 = arith.truncf %18 : vector<8x32xf32> to vector<8x32xbf16>
    %20 = vector.extract_strided_slice %15 {offsets = [0, 0], sizes = [8, 8], strides = [1, 1]} : vector<8x32xbf16> to vector<8x8xbf16>
    %21 = vector.extract_strided_slice %15 {offsets = [0, 8], sizes = [8, 8], strides = [1, 1]} : vector<8x32xbf16> to vector<8x8xbf16>
    %22 = vector.extract_strided_slice %15 {offsets = [0, 16], sizes = [8, 8], strides = [1, 1]} : vector<8x32xbf16> to vector<8x8xbf16>
    %23 = vector.extract_strided_slice %15 {offsets = [0, 24], sizes = [8, 8], strides = [1, 1]} : vector<8x32xbf16> to vector<8x8xbf16>
    %24 = vector.shape_cast %20 : vector<8x8xbf16> to vector<1x8x8xbf16>
    %25 = vector.shape_cast %21 : vector<8x8xbf16> to vector<1x8x8xbf16>
    %26 = vector.shape_cast %22 : vector<8x8xbf16> to vector<1x8x8xbf16>
    %27 = vector.shape_cast %23 : vector<8x8xbf16> to vector<1x8x8xbf16>
    %28 = tpu.concatenate %24, %25, %26, %27 in 0 : vector<1x8x8xbf16>, vector<1x8x8xbf16>, vector<1x8x8xbf16>, vector<1x8x8xbf16> -> vector<4x8x8xbf16>
    %29 = vector.extract_strided_slice %17 {offsets = [0, 0], sizes = [8, 8], strides = [1, 1]} : vector<8x32xbf16> to vector<8x8xbf16>
    %30 = vector.extract_strided_slice %17 {offsets = [0, 8], sizes = [8, 8], strides = [1, 1]} : vector<8x32xbf16> to vector<8x8xbf16>
    %31 = vector.extract_strided_slice %17 {offsets = [0, 16], sizes = [8, 8], strides = [1, 1]} : vector<8x32xbf16> to vector<8x8xbf16>
    %32 = vector.extract_strided_slice %17 {offsets = [0, 24], sizes = [8, 8], strides = [1, 1]} : vector<8x32xbf16> to vector<8x8xbf16>
    %33 = vector.shape_cast %29 : vector<8x8xbf16> to vector<1x8x8xbf16>
    %34 = vector.shape_cast %30 : vector<8x8xbf16> to vector<1x8x8xbf16>
    %35 = vector.shape_cast %31 : vector<8x8xbf16> to vector<1x8x8xbf16>
    %36 = vector.shape_cast %32 : vector<8x8xbf16> to vector<1x8x8xbf16>
    %37 = tpu.concatenate %33, %34, %35, %36 in 0 : vector<1x8x8xbf16>, vector<1x8x8xbf16>, vector<1x8x8xbf16>, vector<1x8x8xbf16> -> vector<4x8x8xbf16>
    %38 = vector.extract_strided_slice %19 {offsets = [0, 0], sizes = [8, 8], strides = [1, 1]} : vector<8x32xbf16> to vector<8x8xbf16>
    %39 = vector.extract_strided_slice %19 {offsets = [0, 8], sizes = [8, 8], strides = [1, 1]} : vector<8x32xbf16> to vector<8x8xbf16>
    %40 = vector.extract_strided_slice %19 {offsets = [0, 16], sizes = [8, 8], strides = [1, 1]} : vector<8x32xbf16> to vector<8x8xbf16>
    %41 = vector.extract_strided_slice %19 {offsets = [0, 24], sizes = [8, 8], strides = [1, 1]} : vector<8x32xbf16> to vector<8x8xbf16>
    %42 = vector.shape_cast %38 : vector<8x8xbf16> to vector<1x8x8xbf16>
    %43 = vector.shape_cast %39 : vector<8x8xbf16> to vector<1x8x8xbf16>
    %44 = vector.shape_cast %40 : vector<8x8xbf16> to vector<1x8x8xbf16>
    %45 = vector.shape_cast %41 : vector<8x8xbf16> to vector<1x8x8xbf16>
    %46 = tpu.concatenate %42, %43, %44, %45 in 0 : vector<1x8x8xbf16>, vector<1x8x8xbf16>, vector<1x8x8xbf16>, vector<1x8x8xbf16> -> vector<4x8x8xbf16>
    "tpu.trace_start"() <{level = 10 : i32, message = "hqd,hkd->hqk"}> : () -> ()
    %cst_11 = arith.constant dense<0.000000e+00> : vector<4x8x8xf32>
    %47 = tpu.matmul %28, %37, %cst_11 {dimension_numbers = #tpu.dot_dimension_numbers<[2], [2], [1], [1], [0, 0, 0, 1, 1, 1], [0], [0]>} : vector<4x8x8xbf16>, vector<4x8x8xbf16>, vector<4x8x8xf32> -> vector<4x8x8xf32>
    "tpu.trace_stop"() : () -> ()
    %cst_12 = arith.constant 0.353553385 : f32
    %48 = vector.broadcast %cst_12 : f32 to vector<4x8x8xf32>
    %49 = arith.mulf %47, %48 : vector<4x8x8xf32>
    %50 = vector.shape_cast %5 : vector<1x8xf32> to vector<1x1x8xf32>
    %51 = vector.broadcast %50 : vector<1x1x8xf32> to vector<4x8x8xf32>
    %52 = arith.addf %49, %51 : vector<4x8x8xf32>
    %cst_13 = arith.constant dense<0xFF800000> : vector<4x8xf32>
    %53 = vector.multi_reduction <maximumf>, %52, %cst_13 [2] : vector<4x8x8xf32> to vector<4x8xf32>
    %54 = vector.shape_cast %53 : vector<4x8xf32> to vector<4x8x1xf32>
    %55 = vector.broadcast %54 : vector<4x8x1xf32> to vector<4x8x8xf32>
    %56 = arith.subf %52, %55 : vector<4x8x8xf32>
    %57 = math.exp %56 : vector<4x8x8xf32>
    %cst_14 = arith.constant dense<0.000000e+00> : vector<4x8xf32>
    %58 = vector.multi_reduction <add>, %57, %cst_14 [2] : vector<4x8x8xf32> to vector<4x8xf32>
    %59 = vector.shape_cast %58 : vector<4x8xf32> to vector<4x8x1xf32>
    %60 = tpu.reciprocal %59 {approx = true} : vector<4x8x1xf32> -> vector<4x8x1xf32>
    %61 = vector.broadcast %60 : vector<4x8x1xf32> to vector<4x8x8xf32>
    %62 = arith.mulf %57, %61 : vector<4x8x8xf32>
    %63 = arith.truncf %62 : vector<4x8x8xf32> to vector<4x8x8xbf16>
    "tpu.trace_start"() <{level = 10 : i32, message = "hqk,hkd->hqd"}> : () -> ()
    %cst_15 = arith.constant dense<0.000000e+00> : vector<4x8x8xf32>
    %64 = tpu.matmul %63, %46, %cst_15 {dimension_numbers = #tpu.dot_dimension_numbers<[2], [1], [1], [2], [0, 0, 0, 1, 1, 2], [0], [0]>} : vector<4x8x8xbf16>, vector<4x8x8xbf16>, vector<4x8x8xf32> -> vector<4x8x8xf32>
    "tpu.trace_stop"() : () -> ()
    %65 = vector.extract_strided_slice %64 {offsets = [0, 0, 0], sizes = [1, 8, 8], strides = [1, 1, 1]} : vector<4x8x8xf32> to vector<1x8x8xf32>
    %66 = vector.shape_cast %65 : vector<1x8x8xf32> to vector<8x8xf32>
    %67 = vector.extract_strided_slice %64 {offsets = [1, 0, 0], sizes = [1, 8, 8], strides = [1, 1, 1]} : vector<4x8x8xf32> to vector<1x8x8xf32>
    %68 = vector.shape_cast %67 : vector<1x8x8xf32> to vector<8x8xf32>
    %69 = vector.extract_strided_slice %64 {offsets = [2, 0, 0], sizes = [1, 8, 8], strides = [1, 1, 1]} : vector<4x8x8xf32> to vector<1x8x8xf32>
    %70 = vector.shape_cast %69 : vector<1x8x8xf32> to vector<8x8xf32>
    %71 = vector.extract_strided_slice %64 {offsets = [3, 0, 0], sizes = [1, 8, 8], strides = [1, 1, 1]} : vector<4x8x8xf32> to vector<1x8x8xf32>
    %72 = vector.shape_cast %71 : vector<1x8x8xf32> to vector<8x8xf32>
    %73 = tpu.concatenate %66, %68, %70, %72 in 1 : vector<8x8xf32>, vector<8x8xf32>, vector<8x8xf32>, vector<8x8xf32> -> vector<8x32xf32>
    %74 = arith.truncf %73 : vector<8x32xf32> to vector<8x32xbf16>
    %c0_16 = arith.constant 0 : index
    %c0_17 = arith.constant 0 : index
    %c0_18 = arith.constant 0 : index
    %75 = vector.load %arg6[%c0_16, %c0_17, %c0_18] : memref<1x32x32xbf16, #tpu.memory_space<vmem>>, vector<1x32x32xbf16>
    %76 = vector.shape_cast %75 : vector<1x32x32xbf16> to vector<32x32xbf16>
    %cst_19 = arith.constant dense<0.000000e+00> : vector<8x32xf32>
    %77 = tpu.matmul %74, %76, %cst_19 {dimension_numbers = #tpu.dot_dimension_numbers<[1], [0], [0], [1], [0, 0, 1, 1], [], []>} : vector<8x32xbf16>, vector<32x32xbf16>, vector<8x32xf32> -> vector<8x32xf32>
    %c0_20 = arith.constant 0 : index
    %c0_21 = arith.constant 0 : index
    %c0_22 = arith.constant 0 : index
    %78 = vector.load %arg7[%c0_20, %c0_21, %c0_22] : memref<1x1x32xf32, #tpu.memory_space<vmem>>, vector<1x1x32xf32>
    %79 = vector.shape_cast %78 : vector<1x1x32xf32> to vector<1x32xf32>
    %80 = vector.broadcast %79 : vector<1x32xf32> to vector<8x32xf32>
    %81 = arith.addf %77, %80 : vector<8x32xf32>
    %82 = arith.addf %81, %3 : vector<8x32xf32>
    %c0_23 = arith.constant 0 : index
    %c0_24 = arith.constant 0 : index
    %c0_25 = arith.constant 0 : index
    %83 = vector.load %arg8[%c0_23, %c0_24, %c0_25] : memref<1x1x32xf32, #tpu.memory_space<vmem>>, vector<1x1x32xf32>
    %84 = vector.shape_cast %83 : vector<1x1x32xf32> to vector<1x32xf32>
    %c0_26 = arith.constant 0 : index
    %c0_27 = arith.constant 0 : index
    %c0_28 = arith.constant 0 : index
    %85 = vector.load %arg9[%c0_26, %c0_27, %c0_28] : memref<1x1x32xf32, #tpu.memory_space<vmem>>, vector<1x1x32xf32>
    %86 = vector.shape_cast %85 : vector<1x1x32xf32> to vector<1x32xf32>
    %cst_29 = arith.constant dense<0.000000e+00> : vector<8xf32>
    %87 = vector.multi_reduction <add>, %82, %cst_29 [1] : vector<8x32xf32> to vector<8xf32>
    %88 = vector.shape_cast %87 : vector<8xf32> to vector<8x1xf32>
    %cst_30 = arith.constant 3.200000e+01 : f32
    %89 = vector.broadcast %cst_30 : f32 to vector<8x1xf32>
    %90 = arith.divf %88, %89 : vector<8x1xf32>
    %91 = vector.broadcast %90 : vector<8x1xf32> to vector<8x32xf32>
    %92 = arith.subf %82, %91 : vector<8x32xf32>
    %93 = arith.mulf %92, %92 : vector<8x32xf32>
    %cst_31 = arith.constant dense<0.000000e+00> : vector<8xf32>
    %94 = vector.multi_reduction <add>, %93, %cst_31 [1] : vector<8x32xf32> to vector<8xf32>
    %95 = vector.shape_cast %94 : vector<8xf32> to vector<8x1xf32>
    %cst_32 = arith.constant 3.200000e+01 : f32
    %96 = vector.broadcast %cst_32 : f32 to vector<8x1xf32>
    %97 = arith.divf %95, %96 : vector<8x1xf32>
    %98 = vector.broadcast %90 : vector<8x1xf32> to vector<8x32xf32>
    %99 = arith.subf %82, %98 : vector<8x32xf32>
    %cst_33 = arith.constant 9.99999974E-6 : f32
    %100 = vector.broadcast %cst_33 : f32 to vector<8x1xf32>
    %101 = arith.addf %97, %100 : vector<8x1xf32>
    %102 = math.rsqrt %101 : vector<8x1xf32>
    %103 = vector.broadcast %102 : vector<8x1xf32> to vector<8x32xf32>
    %104 = arith.mulf %99, %103 : vector<8x32xf32>
    %105 = vector.broadcast %84 : vector<1x32xf32> to vector<8x32xf32>
    %106 = arith.mulf %104, %105 : vector<8x32xf32>
    %107 = vector.broadcast %86 : vector<1x32xf32> to vector<8x32xf32>
    %108 = arith.addf %106, %107 : vector<8x32xf32>
    %109 = arith.truncf %108 : vector<8x32xf32> to vector<8x32xbf16>
    %c0_34 = arith.constant 0 : index
    %c0_35 = arith.constant 0 : index
    %c0_36 = arith.constant 0 : index
    %110 = vector.load %arg10[%c0_34, %c0_35, %c0_36] : memref<1x32x128xbf16, #tpu.memory_space<vmem>>, vector<1x32x128xbf16>
    %111 = vector.shape_cast %110 : vector<1x32x128xbf16> to vector<32x128xbf16>
    %cst_37 = arith.constant dense<0.000000e+00> : vector<8x128xf32>
    %112 = tpu.matmul %109, %111, %cst_37 {dimension_numbers = #tpu.dot_dimension_numbers<[1], [0], [0], [1], [0, 0, 1, 1], [], []>} : vector<8x32xbf16>, vector<32x128xbf16>, vector<8x128xf32> -> vector<8x128xf32>
    %c0_38 = arith.constant 0 : index
    %c0_39 = arith.constant 0 : index
    %c0_40 = arith.constant 0 : index
    %113 = vector.load %arg11[%c0_38, %c0_39, %c0_40] : memref<1x1x128xf32, #tpu.memory_space<vmem>>, vector<1x1x128xf32>
    %114 = vector.shape_cast %113 : vector<1x1x128xf32> to vector<1x128xf32>
    %115 = vector.broadcast %114 : vector<1x128xf32> to vector<8x128xf32>
    %116 = arith.addf %112, %115 : vector<8x128xf32>
    %cst_41 = arith.constant 5.000000e-01 : f32
    %117 = vector.broadcast %cst_41 : f32 to vector<8x128xf32>
    %118 = arith.mulf %117, %116 : vector<8x128xf32>
    %cst_42 = arith.constant 4.471500e-02 : f32
    %119 = vector.broadcast %cst_42 : f32 to vector<8x128xf32>
    %120 = arith.mulf %119, %116 : vector<8x128xf32>
    %121 = arith.mulf %120, %116 : vector<8x128xf32>
    %122 = arith.mulf %121, %116 : vector<8x128xf32>
    %123 = arith.addf %116, %122 : vector<8x128xf32>
    %cst_43 = arith.constant 0.797884583 : f32
    %124 = vector.broadcast %cst_43 : f32 to vector<8x128xf32>
    %125 = arith.mulf %124, %123 : vector<8x128xf32>
    %126 = math.tanh %125 : vector<8x128xf32>
    %cst_44 = arith.constant 1.000000e+00 : f32
    %127 = vector.broadcast %cst_44 : f32 to vector<8x128xf32>
    %128 = arith.addf %127, %126 : vector<8x128xf32>
    %129 = arith.mulf %118, %128 : vector<8x128xf32>
    %130 = arith.truncf %129 : vector<8x128xf32> to vector<8x128xbf16>
    %c0_45 = arith.constant 0 : index
    %c0_46 = arith.constant 0 : index
    %c0_47 = arith.constant 0 : index
    %131 = vector.load %arg12[%c0_45, %c0_46, %c0_47] : memref<1x128x32xbf16, #tpu.memory_space<vmem>>, vector<1x128x32xbf16>
    %132 = vector.shape_cast %131 : vector<1x128x32xbf16> to vector<128x32xbf16>
    %cst_48 = arith.constant dense<0.000000e+00> : vector<8x32xf32>
    %133 = tpu.matmul %130, %132, %cst_48 {dimension_numbers = #tpu.dot_dimension_numbers<[1], [0], [0], [1], [0, 0, 1, 1], [], []>} : vector<8x128xbf16>, vector<128x32xbf16>, vector<8x32xf32> -> vector<8x32xf32>
    %c0_49 = arith.constant 0 : index
    %c0_50 = arith.constant 0 : index
    %c0_51 = arith.constant 0 : index
    %134 = vector.load %arg13[%c0_49, %c0_50, %c0_51] : memref<1x1x32xf32, #tpu.memory_space<vmem>>, vector<1x1x32xf32>
    %135 = vector.shape_cast %134 : vector<1x1x32xf32> to vector<1x32xf32>
    %136 = vector.broadcast %135 : vector<1x32xf32> to vector<8x32xf32>
    %137 = arith.addf %133, %136 : vector<8x32xf32>
    %138 = arith.addf %137, %108 : vector<8x32xf32>
    %c0_52 = arith.constant 0 : index
    %c0_53 = arith.constant 0 : index
    %c0_54 = arith.constant 0 : index
    %139 = vector.load %arg14[%c0_52, %c0_53, %c0_54] : memref<1x1x32xf32, #tpu.memory_space<vmem>>, vector<1x1x32xf32>
    %140 = vector.shape_cast %139 : vector<1x1x32xf32> to vector<1x32xf32>
    %c0_55 = arith.constant 0 : index
    %c0_56 = arith.constant 0 : index
    %c0_57 = arith.constant 0 : index
    %141 = vector.load %arg15[%c0_55, %c0_56, %c0_57] : memref<1x1x32xf32, #tpu.memory_space<vmem>>, vector<1x1x32xf32>
    %142 = vector.shape_cast %141 : vector<1x1x32xf32> to vector<1x32xf32>
    %cst_58 = arith.constant dense<0.000000e+00> : vector<8xf32>
    %143 = vector.multi_reduction <add>, %138, %cst_58 [1] : vector<8x32xf32> to vector<8xf32>
    %144 = vector.shape_cast %143 : vector<8xf32> to vector<8x1xf32>
    %cst_59 = arith.constant 3.200000e+01 : f32
    %145 = vector.broadcast %cst_59 : f32 to vector<8x1xf32>
    %146 = arith.divf %144, %145 : vector<8x1xf32>
    %147 = vector.broadcast %146 : vector<8x1xf32> to vector<8x32xf32>
    %148 = arith.subf %138, %147 : vector<8x32xf32>
    %149 = arith.mulf %148, %148 : vector<8x32xf32>
    %cst_60 = arith.constant dense<0.000000e+00> : vector<8xf32>
    %150 = vector.multi_reduction <add>, %149, %cst_60 [1] : vector<8x32xf32> to vector<8xf32>
    %151 = vector.shape_cast %150 : vector<8xf32> to vector<8x1xf32>
    %cst_61 = arith.constant 3.200000e+01 : f32
    %152 = vector.broadcast %cst_61 : f32 to vector<8x1xf32>
    %153 = arith.divf %151, %152 : vector<8x1xf32>
    %154 = vector.broadcast %146 : vector<8x1xf32> to vector<8x32xf32>
    %155 = arith.subf %138, %154 : vector<8x32xf32>
    %cst_62 = arith.constant 9.99999974E-6 : f32
    %156 = vector.broadcast %cst_62 : f32 to vector<8x1xf32>
    %157 = arith.addf %153, %156 : vector<8x1xf32>
    %158 = math.rsqrt %157 : vector<8x1xf32>
    %159 = vector.broadcast %158 : vector<8x1xf32> to vector<8x32xf32>
    %160 = arith.mulf %155, %159 : vector<8x32xf32>
    %161 = vector.broadcast %140 : vector<1x32xf32> to vector<8x32xf32>
    %162 = arith.mulf %160, %161 : vector<8x32xf32>
    %163 = vector.broadcast %142 : vector<1x32xf32> to vector<8x32xf32>
    %164 = arith.addf %162, %163 : vector<8x32xf32>
    %c0_63 = arith.constant 0 : index
    %c0_64 = arith.constant 0 : index
    %165 = vector.load %arg17[%c0_63, %c0_64] : memref<8x32xf32, #tpu.memory_space<vmem>>, vector<8x32xf32>
    tpu.vector_store %arg17[%c0_63, %c0_64], %164 {strides = array<i32>} : memref<8x32xf32, #tpu.memory_space<vmem>>, vector<8x32xf32>,
    %c0_65 = arith.constant 0 : index
    %c0_66 = arith.constant 0 : index
    %c0_67 = arith.constant 0 : index
    %166 = vector.load %arg16[%c0_65, %c0_66, %c0_67] : memref<1x8x32xf32, #tpu.memory_space<vmem>>, vector<1x8x32xf32>
    %167 = vector.shape_cast %166 : vector<1x8x32xf32> to vector<8x32xf32>
    %168 = vector.shape_cast %164 : vector<8x32xf32> to vector<1x8x32xf32>
    tpu.vector_store %arg16[%c0_65, %c0_66, %c0_67], %168 {strides = array<i32>} : memref<1x8x32xf32, #tpu.memory_space<vmem>>, vector<1x8x32xf32>,
    return
  }
  func.func @transform_0(%arg0: i32, %arg1: i32) -> (i32, i32, i32) {
    %c0_i32 = arith.constant 0 : i32
    %c0_i32_0 = arith.constant 0 : i32
    %c0_i32_1 = arith.constant 0 : i32
    return %arg0, %c0_i32, %c0_i32_0 : i32, i32, i32
  }
  func.func @transform_1(%arg0: i32, %arg1: i32) -> (i32, i32, i32) {
    %c0_i32 = arith.constant 0 : i32
    %c0_i32_0 = arith.constant 0 : i32
    %c0_i32_1 = arith.constant 0 : i32
    return %arg0, %c0_i32, %c0_i32_0 : i32, i32, i32
  }
  func.func @transform_2(%arg0: i32, %arg1: i32) -> (i32, i32, i32) {
    %c0_i32 = arith.constant 0 : i32
    %c0_i32_0 = arith.constant 0 : i32
    %c0_i32_1 = arith.constant 0 : i32
    return %arg1, %c0_i32, %c0_i32_0 : i32, i32, i32
  }
  func.func @transform_3(%arg0: i32, %arg1: i32) -> (i32, i32, i32) {
    %c0_i32 = arith.constant 0 : i32
    %c0_i32_0 = arith.constant 0 : i32
    %c0_i32_1 = arith.constant 0 : i32
    return %arg1, %c0_i32, %c0_i32_0 : i32, i32, i32
  }
  func.func @transform_4(%arg0: i32, %arg1: i32) -> (i32, i32, i32) {
    %c0_i32 = arith.constant 0 : i32
    %c0_i32_0 = arith.constant 0 : i32
    %c0_i32_1 = arith.constant 0 : i32
    return %arg1, %c0_i32, %c0_i32_0 : i32, i32, i32
  }
  func.func @transform_5(%arg0: i32, %arg1: i32) -> (i32, i32, i32) {
    %c0_i32 = arith.constant 0 : i32
    %c0_i32_0 = arith.constant 0 : i32
    %c0_i32_1 = arith.constant 0 : i32
    return %arg1, %c0_i32, %c0_i32_0 : i32, i32, i32
  }
  func.func @transform_6(%arg0: i32, %arg1: i32) -> (i32, i32, i32) {
    %c0_i32 = arith.constant 0 : i32
    %c0_i32_0 = arith.constant 0 : i32
    %c0_i32_1 = arith.constant 0 : i32
    return %arg1, %c0_i32, %c0_i32_0 : i32, i32, i32
  }
  func.func @transform_7(%arg0: i32, %arg1: i32) -> (i32, i32, i32) {
    %c0_i32 = arith.constant 0 : i32
    %c0_i32_0 = arith.constant 0 : i32
    %c0_i32_1 = arith.constant 0 : i32
    return %arg1, %c0_i32, %c0_i32_0 : i32, i32, i32
  }
  func.func @transform_8(%arg0: i32, %arg1: i32) -> (i32, i32, i32) {
    %c0_i32 = arith.constant 0 : i32
    %c0_i32_0 = arith.constant 0 : i32
    %c0_i32_1 = arith.constant 0 : i32
    return %arg1, %c0_i32, %c0_i32_0 : i32, i32, i32
  }
  func.func @transform_9(%arg0: i32, %arg1: i32) -> (i32, i32, i32) {
    %c0_i32 = arith.constant 0 : i32
    %c0_i32_0 = arith.constant 0 : i32
    %c0_i32_1 = arith.constant 0 : i32
    return %arg1, %c0_i32, %c0_i32_0 : i32, i32, i32
  }
  func.func @transform_10(%arg0: i32, %arg1: i32) -> (i32, i32, i32) {
    %c0_i32 = arith.constant 0 : i32
    %c0_i32_0 = arith.constant 0 : i32
    %c0_i32_1 = arith.constant 0 : i32
    return %arg1, %c0_i32, %c0_i32_0 : i32, i32, i32
  }
  func.func @transform_11(%arg0: i32, %arg1: i32) -> (i32, i32, i32) {
    %c0_i32 = arith.constant 0 : i32
    %c0_i32_0 = arith.constant 0 : i32
    %c0_i32_1 = arith.constant 0 : i32
    return %arg1, %c0_i32, %c0_i32_0 : i32, i32, i32
  }
  func.func @transform_12(%arg0: i32, %arg1: i32) -> (i32, i32, i32) {
    %c0_i32 = arith.constant 0 : i32
    %c0_i32_0 = arith.constant 0 : i32
    %c0_i32_1 = arith.constant 0 : i32
    return %arg1, %c0_i32, %c0_i32_0 : i32, i32, i32
  }
  func.func @transform_13(%arg0: i32, %arg1: i32) -> (i32, i32, i32) {
    %c0_i32 = arith.constant 0 : i32
    %c0_i32_0 = arith.constant 0 : i32
    %c0_i32_1 = arith.constant 0 : i32
    return %arg1, %c0_i32, %c0_i32_0 : i32, i32, i32
  }
  func.func @transform_14(%arg0: i32, %arg1: i32) -> (i32, i32, i32) {
    %c0_i32 = arith.constant 0 : i32
    %c0_i32_0 = arith.constant 0 : i32
    %c0_i32_1 = arith.constant 0 : i32
    return %arg0, %c0_i32, %c0_i32_0 : i32, i32, i32
  }
}

</mosaic_0001>

<bundles_post_ra>
// kernel: tpu_custom_call.1
= control target key start
LH: loop header
LB: loop body
LE: loop exit
PB: predicated region body
PF: predicated region fallthrough
CT: control target
= control target key end

     0   :  { %s2145_s0 = inlined_call_operand.vmem [shape: f32[2,8,32], index: 0, kind: input, shape index: {}]   ;;  %s2146_s1 = inlined_call_operand.vmem [shape: f32[2,1,8], index: 1, kind: input, shape index: {}]   ;;  %s2147_s2 = inlined_call_operand.vmem [shape: bf16[2,32,96], index: 2, kind: input, shape index: {}]   ;;  %s2148_s3 = inlined_call_operand.vmem [shape: f32[2,1,96], index: 3, kind: input, shape index: {}]   ;;  %s2149_s4 = inlined_call_operand.vmem [shape: bf16[2,32,32], index: 4, kind: input, shape index: {}]   ;;  %s2150_s5 = inlined_call_operand.vmem [shape: f32[2,1,32], index: 5, kind: input, shape index: {}]   ;;  %s2151_s6 = inlined_call_operand.vmem [shape: f32[2,1,32], index: 6, kind: input, shape index: {}]   ;;  %s2152_s7 = inlined_call_operand.vmem [shape: f32[2,1,32], index: 7, kind: input, shape index: {}]   ;;  %s2153_s8 = inlined_call_operand.vmem [shape: bf16[2,32,128], index: 8, kind: input, shape index: {}]   ;;  %s2154_s9 = inlined_call_operand.vmem [shape: f32[2,1,128], index: 9, kind: input, shape index: {}]   ;;  %s2155_s10 = inlined_call_operand.vmem [shape: bf16[2,128,32], index: 10, kind: input, shape index: {}]   ;;  %s2156_s11 = inlined_call_operand.vmem [shape: f32[2,1,32], index: 11, kind: input, shape index: {}]   ;;  %s2157_s12 = inlined_call_operand.vmem [shape: f32[2,1,32], index: 12, kind: input, shape index: {}]   ;;  %s2158_s13 = inlined_call_operand.vmem [shape: f32[2,1,32], index: 13, kind: input, shape index: {}]   ;;  %s2159_s14 = inlined_call_operand.hbm [shape: f32[2,8,32], index: 14, kind: output, shape index: {}]  }
   0x1   :  { %2175 = sst [smem:[#allocation19_spill]] %s2145_s0 }
   0x2   :  { %2176 = sst [smem:[#allocation20_spill]] %s2146_s1 }
   0x3   :  { %2177 = sst [smem:[#allocation21_spill]] %s2147_s2 }
   0x4   :  { %2178 = sst [smem:[#allocation22_spill]] %s2148_s3 }
   0x5   :  { %2179 = sst [smem:[#allocation23_spill]] %s2149_s4 }
   0x6   :  { %2180 = sst [smem:[#allocation24_spill]] %s2152_s7 }
   0x7   :  { %2181 = sst [smem:[#allocation25_spill]] %s2153_s8 }
   0x8   :  { %2182 = sst [smem:[#allocation26_spill]] %s2157_s12 }
   0x9   :  { %2183 = sst [smem:[#allocation27_spill]] %s2158_s13 }
   0xa   :  { %2184 = sst [smem:[#allocation28_spill]] %s2159_s14 }
   0xb   :  { %19 = vsyncpa [#allocation4], 0 }
   0xc   :  { %21 = vsyncpa [#allocation4 + $0x1], 0  ;;  %s1844_s29 = smov 0   ;;  %s1846_s30 = smov 0  }
   0xd   :  { %s1848_s15 = smov 0   ;;  %s1850_s16 = smov 0  }
   0xe   :  { %s1852_s17 = smov 0   ;;  %s1854_s18 = smov 0  }
   0xf   :  { %s1856_s19 = smov 0   ;;  %s1858_s20 = smov 0  }
  0x10 LB: > { %2185 = sst [smem:[#allocation6_spill]] %s1730_s29  ;;  %s1446_s21 = sadd.s32 4294967295, %s1758_s20   ;;  %s1758_s20 = sphi %s1858_s20, %s27_s20   ;;  %s1754_s19 = sphi %s1856_s19, %s2233_s19   ;;  %s1750_s18 = sphi %s1854_s18, %s2232_s18   ;;  %s1746_s17 = sphi %s1852_s17, %s2231_s17   ;;  %s1742_s16 = sphi %s1850_s16, %s2230_s16   ;;  %s1738_s15 = sphi %s1848_s15, %s2229_s15   ;;  %s1734_s30 = sphi %s1846_s30, %s2228_s30   ;;  %s1730_s29 = sphi %s1844_s29, %s2227_s29  }
  0x11   : > { %2186 = sst [smem:[#allocation7_spill]] %s1734_s30  ;;  %s1447_s22 = sadd.s32 4294967294, %s1758_s20  }
  0x12   : > { %2187 = sst [smem:[#allocation8_spill]] %s1738_s15  ;;  %s36_s23 = sadd.s32 1, %s1750_s18 }
  0x13   : > { %2188 = sst [smem:[#allocation9_spill]] %s1742_s16  ;;  %p37_p0 = scmp.ge.s32.totalorder %s36_s23, 2 }
  0x14   : > { %2189 = sst [smem:[#allocation10_spill]] %s1746_s17  ;;  %s39_s24 = sadd.s32 1, %s1754_s19 }
  0x15   : > { %2190 = sst [smem:[#allocation11_spill]] %s1750_s18  ;;  %p420_p1 = scmp.ne.s32.totalorder %s1738_s15, %s1734_s30 }
  0x16   : > { %2191 = sst [smem:[#allocation12_spill]] %s1754_s19  ;;  %p421_p2 = scmp.eq.s32.totalorder %s1446_s21, 3 }
  0x17   : > { %2192 = sst [smem:[#allocation13_spill]] %s1758_s20  ;;  %s2235_s23 = smov (%p37_p0, %s36_s23), 0 }
  0x18   : > { %2193 = sst [smem:[#allocation14_spill]] %s2235_s23  ;;  %s2237_s24 = smov (!%p37_p0, %s39_s24), %s1754_s19 }
  0x19   : > { %p1893_p3 = por %p421_p2, %p420_p1  ;;  %p426_p4 = scmp.ne.s32.totalorder %s1734_s30, %s1730_s29 }
  0x1a   : > { %p41_p5 = scmp.ge.s32.totalorder %s2237_s24, 2  ;;  %p427_p6 = scmp.eq.s32.totalorder %s1447_s22, 3 }
  0x1b   : > { %s2194_s25 = scalar_select %p1893_p3, 1, 0 }
  0x1c   : > { %p1450_p7 = scmp.ge.s32.totalorder %s1758_s20, 1  ;;  %p538_p8 = scmp.lt.s32.totalorder %s1758_s20, 5 }
  0x1d   : > { %2195 = sst [smem:[#allocation15_spill]] %s2194_s25  ;;  %s2239_s24 = smov (%p41_p5, %s2237_s24), 0 }
  0x1e   : > { %2196 = sst [smem:[#allocation16_spill]] %s2239_s24  ;;  %p1903_p9 = por %p427_p6, %p426_p4 }
  0x1f   : > { %p539_p10 = pnand %p1450_p7, %p538_p8  ;;  %s407_s27 = ssub.s32 %s1754_s19, %s2239_s24 }
  0x20   : > { %s2197_s26 = scalar_select %p1903_p9, 1, 0 }
  0x21   : > { %s410_s28 = sadd.s32 1, %s1738_s15  ;;  %p408_p11 = scmp.eq.s32.totalorder %s407_s27, 0 }
  0x22   : > { %2198 = sst [smem:[#allocation17_spill]] %s2197_s26  ;;  %542 = sbr.rel (%p539_p10) target bundleno = 2050 (0x802), region = 76 }
  0x23   : > { %s1911_s21 = scalar_select %p408_p11, %s1738_s15, %s410_s28  }
  0x24   : > { %s2162_s22 = sand.u32 (!%p539_p10), 1, %s1734_s30   ;;  %p630_p12 = scmp.lt.s32.totalorder (!%p539_p10), %s1746_s17, 1 }
  0x25   : > { %2199 = sst [smem:[#allocation18_spill]] %s1911_s21  ;;  %s1917_s23 = sshll.u32 (!%p539_p10), %s2162_s22, 3 }
  0x26   : > { %p637_p13 = scmp.lt.s32.totalorder (!%p539_p10), %s1742_s16, 1  ;;  %s2201_s0 = sld [smem:[#allocation19_spill]] (!%p539_p10) }
  0x27   : > { %s1921_s18 = scalar_select %p630_p12, %s1746_s17, 1 }
  0x28   : > { %s1924_s27 = scalar_select %p637_p13, %s1742_s16, 1 }
  0x29   : > { %s1452_s28 = sshll.u32 %s1921_s18, 3  ;;  %s2202_s2 = sld [smem:[#allocation21_spill]] }
  0x2a   : > { %s1533_s29 = sshll.u32 %s1924_s27, 4  ;;  %s2203_s3 = sld [smem:[#allocation22_spill]] }
  0x2b   : > { %s2204_s4 = sld [smem:[#allocation23_spill]]  ;;  %s674_s15 = scalar_lea.vmem %s2156_s11, %s1924_s27 }
  0x2c   : > { %s633_s26 = scalar_lea.vmem %s2201_s0, %s1452_s28  ;;  %s2206_s8 = sld [smem:[#allocation25_spill]] }
  0x2d   : > { %s2207_s25 = sld [smem:[#allocation26_spill]]  ;;  %s629_s12 = scalar_lea.vmem [#allocation3], %s1917_s23 }
  0x2e   : > { %s2209_s13 = sld [smem:[#allocation9_spill]] }
  0x2f   : > { %s641_s14 = scalar_lea.vmem %s2202_s2, %s1533_s29 }
  0x30   : > { %s644_s16 = scalar_lea.vmem %s2203_s3, %s1924_s27  ;;  %s666_s3 = scalar_lea.vmem %s2154_s9, %s1924_s27 }
  0x31   : > { %s1945_s24 = scalar_lea.vmem %s2204_s4, %s1533_s29  ;;  %s1536_s4 = sshll.u32 %s1924_s27, 6 }
  0x32   : > { %s1962_s17 = scalar_lea.vmem %s2206_s8, %s1533_s29  ;;  %s1976_s0 = scalar_lea.vmem %s2155_s10, %s1536_s4 }
  0x33   : > { %s677_s2 = scalar_lea.vmem %s2207_s25, %s1924_s27  ;;  %s2208_s8 = sld [smem:[#allocation27_spill]] }
  0x34   : > { %p1461_p0 = scmp.ne.s32.totalorder %s2209_s13, 0 }
  0x36   : > { %685 = sbr.rel (%p1461_p0) target bundleno = 61 (0x3d), region = 80 }
  0x39   : > { %s680_s7 = scalar_lea.vmem %s2208_s8, %s1924_s27 }
  0x3b   : > { %v686_v0 = vld [vmem:[%s633_s26] sm:$0xff]  ;;  %vm687_vm0 = vcmask 261120  }
  0x3c   : > { %688 = vst.msk [vmem:[#allocation2] sm:$0xff] %vm687_vm0, %v686_v0 }
  0x3d PF: > { %v1538_v1 = vld [vmem:[%s641_s14 + $0x8] sm:$0xff]  ;;  %v1537_v2 = vld [vmem:[%s641_s14] sm:$0xff]  ;;  %vm712_vm1 = vcmask 261120   ;;  %s1760_s4 = smov 104   ;;  %s1761_s8 = smov 120   ;;  %vm741_vm2 = vcmask 64512  }
  0x3e   : > { %722 = vmatpush.bf16.msra.mxu0 %v1538_v1  ;;  %v1631_v5 = vld [vmem:[%s644_s16] ss:$0 sm:$0xff]  ;;  %s1762_s14 = smov 112   ;;  %s1763_s26 = smov 96   ;;  %vm894_vm3 = vcmask 1043456   ;;  %vm987_vm4 = vcmask 130048  }
  0x3f   : > { %s2210_s19 = sld [smem:[#allocation20_spill]]  ;;  %s1765_s21 = smov 16   ;;  %vm989_vm5 = vcmask 195584  }
  0x40   : > { %s1766_s28 = smov 8   ;;  %s1767_s1 = smov 24  }
  0x41   : > { %s2212_s30 = scalar_lea.vmem %s2150_s5, %s1924_s27  ;;  %s2213_s13 = scalar_lea.vmem %s2151_s6, %s1924_s27 }
  0x42   : > { %723 = vmatpush.bf16.msra.mxu0 %v1537_v2  ;;  %s2219_s29 = sld [smem:[#allocation28_spill]] }
  0x43   : > { %v1988_v3 = vld [vmem:[#allocation2] sm:$0xff] }
  0x44   : > { %v691_v4 = vpack.c.bf16 %v1988_v3, %v1988_v3 }
  0x45   : > { %s2211_s22 = scalar_lea.vmem %s2210_s19, %s1921_s18  ;;  %s1764_s18 = smov 64  }
  0x46   : > { %1470 = vmatmul.msk.bf16.vlgmr.msra.gmra.mxu0 %vm712_vm1, %v691_v4  ;;  %v1632_v33 = vld [vmem:[%s2211_s22] ss:$0 sm:$0xff]  ;;  %s2217_s22 = sld [smem:[#allocation7_spill]] }
  0xc3   : > { %v725_v6 = vpop.f32.mrf.mxu0 }
  0xc4   : > { %v726_v7 = vadd.f32 %v1631_v5, %v725_v6 }
  0xc6   : > { %v729_v8 = vpack.c.bf16 %v726_v7, %v726_v7 }
  0xc8   : > { %735 = vrot.lane.b32.xlu1 %v729_v8, %s1760_s4  ;;  %731 = vrot.lane.b32.xlu0 %v729_v8, %s1761_s8  ;;  %v737_v10 = vunpack.c.l.b16 %v729_v8 }
  0xca   : > { %v1993_v11 = vpack.c.b16 %v737_v10, %v737_v10 }
  0xcb   : > { %v727_v9 = vpop.f32.mrf.mxu0 }
  0xd0   : > { %733 = vrot.lane.b32.xlu0 %v729_v8, %s1762_s14  ;;  %s2214_s14 = sld [smem:[#allocation24_spill]] }
  0xd8   : > { %739 = vrot.lane.b32.xlu0 %v1993_v11, %s1763_s26 }
 0x13a   : > { %v732_v12 = vpop.permute.xlu0 %731  ;;  %v736_v18 = vpop.permute.xlu1 %735 }
 0x13b   : > { %v761_v13 = vunpack.c.l.b16 %v732_v12  ;;  %v807_v19 = vunpack.c.l.b16 %v736_v18 }
 0x13d   : > { %v1996_v14 = vpack.c.b16 %v761_v13, %v761_v13  ;;  %v808_v22 = vpack.c.b16 %v807_v19, %v807_v19 }
 0x13f   : > { %763 = vrot.lane.b32.xlu1 %v1996_v14, %s1763_s26 }
 0x142   : > { %v734_v15 = vpop.permute.xlu0 %733 }
 0x143   : > { %v784_v16 = vunpack.c.l.b16 %v734_v15 }
 0x145   : > { %v1999_v17 = vpack.c.b16 %v784_v16, %v784_v16 }
 0x147   : > { %786 = vrot.lane.b32.xlu2 %v1999_v17, %s1763_s26 }
 0x14a   : > { %v740_v20 = vpop.permute.xlu0 %739 }
 0x14b   : > { %v746_v21 = vsel %vm741_vm2, %v740_v20, 0 }
 0x14c   : > { %755 = vmatpush.bf16.xpose.msra.mxu1 %v746_v21 }
 0x14f   : > { %809 = vrot.lane.b32.xlu2 %v808_v22, %s1763_s26  ;;  %s2215_s26 = scalar_lea.vmem %s2214_s14, %s1924_s27  ;;  %s1244_s14 = sshll.u32 %s629_s12, 4  ;;  %s1245_s14 = int_to_ptr.vmem [resolvable:$true] %s1244_s14 }
 0x153   : > { %1471 = vmatmul.msk.bf16.vlgmr.msra.gmra.mxu1 %vm741_vm2, %v729_v8 }
 0x1a1   : > { %v787_v23 = vpop.permute.xlu2 %786 }
 0x1a2   : > { %v792_v24 = vsel %vm741_vm2, %v787_v23, 0 }
 0x1a3   : > { %801 = vmatpush.bf16.xpose.msra.mxu3 %v792_v24 }
 0x1a9   : > { %v810_v25 = vpop.permute.xlu2 %809 }
 0x1aa   : > { %1473 = vmatmul.msk.bf16.vlgmr.msra.gmra.mxu3 %vm741_vm2, %v734_v15  ;;  %v815_v26 = vsel %vm741_vm2, %v810_v25, 0 }
 0x1ab   : > { %824 = vmatpush.bf16.xpose.msrb.mxu0 %v815_v26 }
 0x1b1   : > { %v764_v27 = vpop.permute.xlu1 %763 }
 0x1b2   : > { %1474 = vmatmul.msk.bf16.vlgmr.msrb.gmra.mxu0 %vm741_vm2, %v736_v18  ;;  %v769_v28 = vsel %vm741_vm2, %v764_v27, 0 }
 0x1b3   : > { %778 = vmatpush.bf16.xpose.msra.mxu2 %v769_v28 }
 0x1ba   : > { %1472 = vmatmul.msk.bf16.vlgmr.msra.gmra.mxu2 %vm741_vm2, %v732_v12 }
 0x1d0   : > { %v757_v29 = vpop.f32.mrf.mxu1 }
 0x1d1   : > { %v830_v37 = vmul.f32 0.35355338, %v757_v29 }
 0x1d3   : > { %v837_v42 = vadd.f32 %v1632_v33, %v830_v37 }
 0x1d5   : > { %v841_v44 = vsel %vm741_vm2, %v837_v42, -inf }
 0x1d8   : > { %v759_v30 = vpop.f32.mrf.mxu1 }
 0x22d   : > { %v803_v31 = vpop.f32.mrf.mxu3 }
 0x22e   : > { %v832_v32 = vmul.f32 0.35355338, %v803_v31 }
 0x22f   : > { %v826_v34 = vpop.f32.mrf.mxu0 }
 0x230   : > { %v833_v35 = vmul.f32 0.35355338, %v826_v34  ;;  %v839_v36 = vadd.f32 %v1632_v33, %v832_v32 }
 0x232   : > { %v847_v38 = vsel %vm741_vm2, %v839_v36, -inf  ;;  %v840_v39 = vadd.f32 %v1632_v33, %v833_v35 }
 0x233   : > { %848 = vmax.xlane.f32.xlu2 %v847_v38 }
 0x234   : > { %v850_v40 = vsel %vm741_vm2, %v840_v39, -inf }
 0x235   : > { %v805_v41 = vpop.f32.mrf.mxu3  ;;  %851 = vmax.xlane.f32.xlu0 %v850_v40  ;;  %v1539_v40 = vld [vmem:[%s1945_s24] sm:$0xff] }
 0x237   : > { %v828_v43 = vpop.f32.mrf.mxu0 }
 0x23b   : > { %842 = vmax.xlane.f32.xlu2 %v841_v44 }
 0x23d   : > { %v780_v45 = vpop.f32.mrf.mxu2 }
 0x23e   : > { %v831_v46 = vmul.f32 0.35355338, %v780_v45 }
 0x240   : > { %v838_v47 = vadd.f32 %v1632_v33, %v831_v46 }
 0x242   : > { %v844_v48 = vsel %vm741_vm2, %v838_v47, -inf }
 0x243   : > { %845 = vmax.xlane.f32.xlu1 %v844_v48  ;;  %v1633_v48 = vld [vmem:[%s2212_s30] ss:$0 sm:$0xff] }
 0x245   : > { %v782_v49 = vpop.f32.mrf.mxu2 }
 0x2a6   : > { %v849_v50 = vpop.xlane.xlu2 %848 }
 0x2a7   : > { %v855_v51 = vsub.f32 %v839_v36, %v849_v50 }
 0x2a8   : > { %v852_v52 = vpop.xlane.xlu0 %851 }
 0x2a9   : > { %v861_v53 = vmul.f32 1.442695, %v855_v51  ;;  %v856_v54 = vsub.f32 %v840_v39, %v852_v52  ;;  %v1540_v39 = vld [vmem:[%s1945_s24 + $0x8] sm:$0xff]  ;;  %s2220_s24 = smov %s2219_s29 }
 0x2aa   : > { %s1684_s19 = scalar_lea.hbm %s2220_s24, 16 }
 0x2ab   : > { %1640 = vpow2.f32 %v861_v53  ;;  %v863_v55 = vmul.f32 1.442695, %v856_v54  ;;  %v1768_v54 = vmov 32.0  }
 0x2ad   : > { %1642 = vpow2.f32 %v863_v55 }
 0x2ae   : > { %v843_v1 = vpop.xlane.xlu2 %842 }
 0x2af   : > { %v853_v2 = vsub.f32 %v837_v42, %v843_v1  ;;  %v1542_v1 = vld [vmem:[%s1962_s17 + $0x8] sm:$0xff] }
 0x2b1   : > { %v1641_v56 = vpop.eup %1640  ;;  %v857_v4 = vmul.f32 1.442695, %v853_v2  ;;  %v1541_v2 = vld [vmem:[%s1962_s17] sm:$0xff] }
 0x2b2   : > { %v871_v57 = vsel %vm741_vm2, %v1641_v56, 0.0 }
 0x2b3   : > { %v1643_v58 = vpop.eup %1642  ;;  %872 = vadd.xlane.f32.xlu2 %v871_v57 }
 0x2b4   : > { %v874_v59 = vsel %vm741_vm2, %v1643_v58, 0.0 }
 0x2b5   : > { %875 = vadd.xlane.f32.xlu0 %v874_v59 }
 0x2b6   : > { %v846_v60 = vpop.xlane.xlu1 %845 }
 0x2b7   : > { %v854_v61 = vsub.f32 %v838_v47, %v846_v60 }
 0x2b9   : > { %v859_v62 = vmul.f32 1.442695, %v854_v61 }
 0x2bb   : > { %1644 = vpow2.f32 %v859_v62 }
 0x2bc   : > { %1646 = vpow2.f32 %v857_v4  ;;  %v1550_v4 = vld [vmem:[%s1976_s0 + $0x38] sm:$0xff] }
 0x2c1   : > { %v1645_v63 = vpop.eup %1644 }
 0x2c2   : > { %v868_v0 = vsel %vm741_vm2, %v1645_v63, 0.0  ;;  %v1647_v5 = vpop.eup %1646 }
 0x2c3   : > { %869 = vadd.xlane.f32.xlu1 %v868_v0  ;;  %v865_v6 = vsel %vm741_vm2, %v1647_v5, 0.0 }
 0x2c9   : > { %953 = vrot.lane.b32.xlu0 %v808_v22, %s1764_s18 }
 0x2cb   : > { %932 = vrot.lane.b32.xlu2 %v1999_v17, %s1764_s18 }
 0x2d1   : > { %889 = vrot.lane.b32.xlu0 %v1993_v11, %s1764_s18 }
 0x2dc   : > { %911 = vrot.lane.b32.xlu1 %v1996_v14, %s1764_s18 }
 0x306   : > { %866 = vadd.xlane.f32.xlu1 %v865_v6 }
 0x326   : > { %v873_v7 = vpop.xlane.xlu2 %872 }
 0x327   : > { %1648 = vrcp.f32 %v873_v7  ;;  %v1549_v7 = vld [vmem:[%s1976_s0 + $0x30] sm:$0xff] }
 0x328   : > { %v876_v10 = vpop.xlane.xlu0 %875 }
 0x329   : > { %1650 = vrcp.f32 %v876_v10 }
 0x32d   : > { %v1649_v8 = vpop.eup %1648 }
 0x32e   : > { %v883_v9 = vmul.f32 %v1649_v8, %v1641_v56  ;;  %v933_v12 = vpop.permute.xlu2 %932 }
 0x32f   : > { %v938_v13 = vsel %vm894_vm3, %v933_v12, 0  ;;  %v1651_v14 = vpop.eup %1650 }
 0x330   : > { %947 = vmatpush.bf16.msrb.mxu3 %v938_v13  ;;  %v887_v11 = vpack.c.bf16 %v883_v9, %v883_v9  ;;  %v884_v15 = vmul.f32 %v1651_v14, %v1643_v58 }
 0x332   : > { %v888_v18 = vpack.c.bf16 %v884_v15, %v884_v15  ;;  %v1634_v15 = vld [vmem:[%s2213_s13] ss:$0 sm:$0xff] }
 0x333   : > { %1477 = vmatmul.msk.bf16.vlgmr.msrb.gmra.mxu3 %vm741_vm2, %v887_v11 }
 0x334   : > { %1183 = vmatpush.bf16.msra.mxu3 %v1550_v4 }
 0x336   : > { %v870_v19 = vpop.xlane.xlu1 %869 }
 0x337   : > { %1652 = vrcp.f32 %v870_v19 }
 0x338   : > { %1184 = vmatpush.bf16.msra.mxu3 %v1549_v7 }
 0x33b   : > { %v954_v16 = vpop.permute.xlu0 %953 }
 0x33c   : > { %v959_v17 = vsel %vm894_vm3, %v954_v16, 0 }
 0x33d   : > { %968 = vmatpush.bf16.msra.mxu0 %v959_v17  ;;  %v1653_v22 = vpop.eup %1652  ;;  %v1635_v17 = vld [vmem:[%s2215_s26] ss:$0 sm:$0xff] }
 0x33e   : > { %v882_v23 = vmul.f32 %v1653_v22, %v1645_v63  ;;  %v1548_v22 = vld [vmem:[%s1976_s0 + $0x28] sm:$0xff] }
 0x33f   : > { %1185 = vmatpush.bf16.msra.mxu3 %v1548_v22 }
 0x340   : > { %1478 = vmatmul.msk.bf16.vlgmr.msra.gmra.mxu0 %vm741_vm2, %v888_v18  ;;  %v886_v26 = vpack.c.bf16 %v882_v23, %v882_v23  ;;  %v1547_v23 = vld [vmem:[%s1976_s0 + $0x20] sm:$0xff] }
 0x343   : > { %v890_v20 = vpop.permute.xlu0 %889  ;;  %1186 = vmatpush.bf16.msra.mxu3 %v1547_v23 }
 0x344   : > { %v896_v21 = vsel %vm894_vm3, %v890_v20, 0 }
 0x345   : > { %905 = vmatpush.bf16.msrb.mxu1 %v896_v21 }
 0x349   : > { %1021 = vmatpush.bf16.msra.mxu1 %v1540_v39 }
 0x34d   : > { %1022 = vmatpush.bf16.msra.mxu1 %v1539_v40 }
 0x34e   : > { %v912_v24 = vpop.permute.xlu1 %911 }
 0x34f   : > { %v917_v25 = vsel %vm894_vm3, %v912_v24, 0  ;;  %v1546_v24 = vld [vmem:[%s1976_s0 + $0x18] sm:$0xff] }
 0x350   : > { %926 = vmatpush.bf16.msrb.mxu2 %v917_v25  ;;  %1187 = vmatpush.bf16.msra.mxu3 %v1546_v24  ;;  %v1545_v25 = vld [vmem:[%s1976_s0 + $0x10] sm:$0xff] }
 0x353   : > { %1476 = vmatmul.msk.bf16.vlgmr.msrb.gmra.mxu2 %vm741_vm2, %v886_v26  ;;  %v1544_v26 = vld [vmem:[%s1976_s0 + $0x8] sm:$0xff] }
 0x354   : > { %1098 = vmatpush.bf16.msra.mxu2 %v1542_v1  ;;  %1188 = vmatpush.bf16.msra.mxu3 %v1545_v25 }
 0x358   : > { %1099 = vmatpush.bf16.msra.mxu2 %v1541_v2  ;;  %1189 = vmatpush.bf16.msra.mxu3 %v1544_v26 }
 0x379   : > { %v867_v27 = vpop.xlane.xlu1 %866 }
 0x37a   : > { %1654 = vrcp.f32 %v867_v27  ;;  %v1543_v27 = vld [vmem:[%s1976_s0] sm:$0xff] }
 0x37b   : > { %1656 = vrcp.f32 %v1768_v54  ;;  %1190 = vmatpush.bf16.msra.mxu3 %v1543_v27 }
 0x380   : > { %v1655_v28 = vpop.eup %1654 }
 0x381   : > { %v881_v29 = vmul.f32 %v1655_v28, %v1647_v5  ;;  %v1657_v55 = vpop.eup %1656  ;;  %v1636_v28 = vld [vmem:[%s666_s3] ss:$0 sm:$0xff]  ;;  %s2216_s3 = sld [smem:[#allocation10_spill]] }
 0x382   : > { %v1035_v56 = vmul.f32 32.0, %v1657_v55  ;;  %vm1039_vm6 = vweird.f32 %v1657_v55 }
 0x383   : > { %v885_v30 = vpack.c.bf16 %v881_v29, %v881_v29 }
 0x384   : > { %v1036_v57 = vsub.f32 1.0, %v1035_v56 }
 0x385   : > { %1475 = vmatmul.msk.bf16.vlgmr.msrb.gmra.mxu1 %vm741_vm2, %v885_v30 }
 0x386   : > { %v1037_v58 = vmul.f32 %v1657_v55, %v1036_v57 }
 0x388   : > { %v1038_v59 = vadd.f32 %v1657_v55, %v1037_v58 }
 0x38a   : > { %v2045_v60 = vsel %vm1039_vm6, %v1657_v55, %v1038_v59 }
 0x3b6   : > { %v949_v31 = vpop.f32.mrf.mxu3 }
 0x3b7   : > { %979 = vrot.lane.b32.xlu0 %v949_v31, %s1765_s21 }
 0x3bd   : > { %v970_v32 = vpop.f32.mrf.mxu0 }
 0x3be   : > { %v951_v33 = vpop.f32.mrf.mxu3 }
 0x3c5   : > { %v972_v34 = vpop.f32.mrf.mxu0 }
 0x3d6   : > { %v928_v35 = vpop.f32.mrf.mxu2 }
 0x3d7   : > { %975 = vrot.lane.b32.xlu2 %v928_v35, %s1766_s28 }
 0x3de   : > { %v930_v36 = vpop.f32.mrf.mxu2 }
 0x3df   : > { %983 = vrot.lane.b32.xlu2 %v970_v32, %s1767_s1 }
 0x402   : > { %v907_v37 = vpop.f32.mrf.mxu1 }
 0x40a   : > { %v909_v38 = vpop.f32.mrf.mxu1 }
 0x429   : > { %v980_v43 = vpop.permute.xlu0 %979 }
 0x431   : > { %v976_v41 = vpop.permute.xlu2 %975 }
 0x432   : > { %v986_v42 = vsel %vm741_vm2, %v907_v37, %v976_v41 }
 0x433   : > { %v988_v45 = vsel %vm987_vm4, %v986_v42, %v980_v43  ;;  %v1637_v42 = vld [vmem:[%s674_s15] ss:$0 sm:$0xff]  ;;  %s1530_s15 = sshll.u32 %s2216_s3, 3 }
 0x434   : > { %s1242_s30 = scalar_lea.hbm %s2219_s29, %s1530_s15 }
 0x435   : > { %s1246_s26 = sshll.u32 %s1242_s30, 4  ;;  %s1247_s26 = int_to_ptr.hbm [resolvable:$true] %s1246_s26 }
 0x436   : > { %s1678_s25 = sshra.s32 %s1247_s26, 4  ;;  %s1679_s25 = int_to_ptr.hbm [resolvable:$true] %s1678_s25 }
 0x437   : > { %s1680_s0 = scalar_lea.hbm %s1679_s25, 8  ;;  %p1685_p5 = scmp.lt.s32.totalorder %s1679_s25, %s2220_s24 }
 0x438   : > { %p1681_p1 = scmp.ne.s32.totalorder %s1679_s25, %s1680_s0  ;;  %p1686_p6 = scmp.lt.s32.totalorder %s1684_s19, %s1680_s0 }
 0x439   : > { %v984_v44 = vpop.permute.xlu2 %983 }
 0x43a   : > { %v990_v46 = vsel %vm989_vm5, %v988_v45, %v984_v44  ;;  %p1682_p2 = pnand %p1681_p1, %p1893_p3  ;;  %p1687_p7 = por %p1686_p6, %p1685_p5 }
 0x43b   : > { %v991_v47 = vpack.c.bf16 %v990_v46, %v990_v46 }
 0x43c   : > { %p1683_p4 = pneg %p1682_p2 }
 0x43d   : > { %1487 = vmatmul.msk.bf16.vlgmr.msra.gmra.mxu1 %vm712_vm1, %v991_v47 }
 0x43e   : > { %p1688_p8 = pnand %p1687_p7, %p1683_p4 }
 0x4ba   : > { %v1024_v49 = vpop.f32.mrf.mxu1 }
 0x4bb   : > { %v1025_v50 = vadd.f32 %v1633_v48, %v1024_v49 }
 0x4bd   : > { %v1028_v51 = vadd.f32 %v1025_v50, %v1988_v3 }
 0x4bf   : > { %v1031_v52 = vsel %vm712_vm1, %v1028_v51, 0.0 }
 0x4c0   : > { %1032 = vadd.xlane.f32.xlu0 %v1031_v52 }
 0x4c2   : > { %v1026_v53 = vpop.f32.mrf.mxu1 }
 0x533   : > { %v1033_v61 = vpop.xlane.xlu0 %1032 }
 0x534   : > { %v1041_v3 = vmul.f32 %v2045_v60, %v1033_v61 }
 0x536   : > { %v1042_v62 = vsub.f32 %v1028_v51, %v1041_v3 }
 0x538   : > { %v1043_v63 = vmul.f32 %v1042_v62, %v1042_v62 }
 0x53a   : > { %v1044_v0 = vsel %vm712_vm1, %v1043_v63, 0.0 }
 0x53b   : > { %1045 = vadd.xlane.f32.xlu2 %v1044_v0  ;;  %v1639_v0 = vld [vmem:[%s680_s7] ss:$0 sm:$0xff] }
 0x5ae   : > { %v1046_v5 = vpop.xlane.xlu2 %1045 }
 0x5af   : > { %v1047_v6 = vmul.f32 %v1046_v5, %v2045_v60 }
 0x5b1   : > { %v1048_v8 = vadd.f32 1e-05, %v1047_v6 }
 0x5b3   : > { %1658 = vrsqrt.f32 %v1048_v8  ;;  %vm1055_vm8 = vweird.f32 %v1048_v8 }
 0x5b9   : > { %v1659_v9 = vpop.eup %1658 }
 0x5ba   : > { %v1050_v10 = vmul.f32 %v1659_v9, %v1048_v8  ;;  %vm1056_vm7 = vweird.f32 %v1659_v9 }
 0x5bb   : > { %vm1057_vm9 = vmor %vm1055_vm8, %vm1056_vm7 }
 0x5bc   : > { %v1051_v12 = vmul.f32 %v1659_v9, %v1050_v10 }
 0x5be   : > { %v1052_v13 = vmul.f32 0.5, %v1051_v12 }
 0x5c0   : > { %v1053_v11 = vsub.f32 1.5, %v1052_v13 }
 0x5c2   : > { %v1054_v14 = vmul.f32 %v1659_v9, %v1053_v11 }
 0x5c4   : > { %v1058_v16 = vsel %vm1057_vm9, %v1659_v9, %v1054_v14 }
 0x5c5   : > { %v1059_v18 = vmul.f32 %v1058_v16, %v1042_v62 }
 0x5c7   : > { %v1063_v19 = vmul.f32 %v1634_v15, %v1059_v18 }
 0x5c9   : > { %v1067_v20 = vadd.f32 %v1635_v17, %v1063_v19 }
 0x5cb   : > { %v1068_v21 = vpack.c.bf16 %v1067_v20, %v1067_v20 }
 0x5cd   : > { %1496 = vmatmul.msk.bf16.vlgmr.msra.gmra.mxu2 %vm712_vm1, %v1068_v21 }
 0x650   : > { %v1101_v29 = vpop.f32.mrf.mxu2 }
 0x651   : > { %v1102_v30 = vadd.f32 %v1636_v28, %v1101_v29 }
 0x653   : > { %v1106_v31 = vmul.f32 0.044715, %v1102_v30  ;;  %v1105_v38 = vmul.f32 0.5, %v1102_v30 }
 0x655   : > { %v1107_v32 = vmul.f32 %v1106_v31, %v1102_v30 }
 0x657   : > { %v1108_v33 = vmul.f32 %v1107_v32, %v1102_v30 }
 0x658   : > { %v1103_v34 = vpop.f32.mrf.mxu2 }
 0x659   : > { %v1109_v35 = vadd.f32 %v1108_v33, %v1102_v30 }
 0x65b   : > { %v1110_v36 = vmul.f32 0.7978846, %v1109_v35 }
 0x65d   : > { %1660 = vtanh.f32 %v1110_v36 }
 0x663   : > { %v1661_v37 = vpop.eup %1660 }
 0x664   : > { %v1112_v39 = vadd.f32 1.0, %v1661_v37 }
 0x666   : > { %v1113_v40 = vmul.f32 %v1112_v39, %v1105_v38 }
 0x668   : > { %v1114_v41 = vpack.c.bf16 %v1113_v40, %v1113_v40 }
 0x66a   : > { %1191 = vmatmul.bf16.vlgmr.msra.gmra.mxu3 %v1114_v41 }
 0x6ed   : > { %v1192_v43 = vpop.f32.mrf.mxu3 }
 0x6ee   : > { %v1193_v44 = vadd.f32 %v1637_v42, %v1192_v43 }
 0x6f0   : > { %v1196_v45 = vadd.f32 %v1193_v44, %v1067_v20 }
 0x6f2   : > { %v1199_v46 = vsel %vm712_vm1, %v1196_v45, 0.0 }
 0x6f3   : > { %1200 = vadd.xlane.f32.xlu1 %v1199_v46 }
 0x6f5   : > { %v1194_v47 = vpop.f32.mrf.mxu3 }
 0x766   : > { %v1201_v48 = vpop.xlane.xlu1 %1200 }
 0x767   : > { %v1202_v49 = vmul.f32 %v1201_v48, %v2045_v60 }
 0x769   : > { %v1203_v50 = vsub.f32 %v1196_v45, %v1202_v49 }
 0x76b   : > { %v1204_v51 = vmul.f32 %v1203_v50, %v1203_v50 }
 0x76d   : > { %v1205_v52 = vsel %vm712_vm1, %v1204_v51, 0.0 }
 0x76e   : > { %1206 = vadd.xlane.f32.xlu1 %v1205_v52 }
 0x7e1   : > { %v1207_v53 = vpop.xlane.xlu1 %1206 }
 0x7e2   : > { %v1208_v54 = vmul.f32 %v1207_v53, %v2045_v60  ;;  %v1638_v60 = vld [vmem:[%s677_s2] ss:$0 sm:$0xff]  ;;  %s2223_s2 = sand.u32 1, %s2217_s22  }
 0x7e3   : > { %s1232_s16 = scalar_lea.sflag [#allocation4], %s2223_s2 }
 0x7e4   : > { %v1209_v55 = vadd.f32 1e-05, %v1208_v54 }
 0x7e6   : > { %1662 = vrsqrt.f32 %v1209_v55  ;;  %vm1216_vm11 = vweird.f32 %v1209_v55 }
 0x7ec   : > { %v1663_v56 = vpop.eup %1662 }
 0x7ed   : > { %v1211_v57 = vmul.f32 %v1663_v56, %v1209_v55  ;;  %vm1217_vm10 = vweird.f32 %v1663_v56 }
 0x7ee   : > { %vm1218_vm12 = vmor %vm1216_vm11, %vm1217_vm10 }
 0x7ef   : > { %v1212_v58 = vmul.f32 %v1663_v56, %v1211_v57 }
 0x7f1   : > { %v1213_v59 = vmul.f32 0.5, %v1212_v58 }
 0x7f3   : > { %v1214_v61 = vsub.f32 1.5, %v1213_v59 }
 0x7f5   : > { %v1215_v3 = vmul.f32 %v1663_v56, %v1214_v61 }
 0x7f7   : > { %v1219_v62 = vsel %vm1218_vm12, %v1663_v56, %v1215_v3 }
 0x7f8   : > { %v1220_v63 = vmul.f32 %v1219_v62, %v1203_v50 }
 0x7fa   : > { %v1224_v1 = vmul.f32 %v1638_v60, %v1220_v63 }
 0x7fc   : > { %v1228_v2 = vadd.f32 %v1639_v0, %v1224_v1 }
 0x7fe   : > { %1229 = vst.msk [vmem:[#allocation2] sm:$0xff] %vm712_vm1, %v1228_v2 }
 0x7ff   : > { %1230 = vst.msk [vmem:[%s629_s12] sm:$0xff] %vm712_vm1, %v1228_v2 }
 0x800   : > { %1691 = shalt.err (!%p1688_p8)
}
 0x801   : > { %1551 = dma.vmem_to_hbm [thread:$0]  (%p1893_p3), %s1245_s14, 128, %s1247_s26, %s1232_s16  }
 0x802 PF: > { %s2224_s23 = sld [smem:[#allocation13_spill]] }
 0x803   : > { %s2225_s12 = sld [smem:[#allocation6_spill]] }
 0x808   : > { %p1557_p10 = scmp.ge.s32.totalorder %s2224_s23, 2 }
 0x809   : > { %s1258_s18 = sand.u32 1, %s2225_s12  }
 0x80a   : > { %p1554_p11 = pnand %p1557_p10, %p1903_p9  ;;  %s1259_s21 = scalar_lea.sflag [#allocation4], %s1258_s18 }
 0x80c   : > { %p1555_p12 = pneg %p1554_p11 }
 0x80e   : > { %1725 = dma.done.wait (%p1555_p12), %s1259_s21, 128  }
 0x80f   : > { %1727 = vsyncadd (%p1555_p12), %s1259_s21, 4294967168  ;;  %s27_s20 = sadd.s32 1, %s2224_s23   ;;  %s2227_s29 = sld [smem:[#allocation7_spill]] }
 0x810   : > { %p24_p13 = scmp.ge.s32.totalorder %s27_s20, 6   ;;  %s2228_s30 = sld [smem:[#allocation8_spill]] }
 0x811   : > { %s2229_s15 = sld [smem:[#allocation18_spill]] }
 0x812   : > { %s2230_s16 = sld [smem:[#allocation11_spill]]  ;;  %26 = sbr.rel (!%p24_p13) target bundleno = 16 (0x10), region = 154 }
 0x813   : > { %s2231_s17 = sld [smem:[#allocation12_spill]] }
 0x814   : > { %s2232_s18 = sld [smem:[#allocation14_spill]] }
 0x815   : > { %s2233_s19 = sld [smem:[#allocation16_spill]] }
 0x817   :  { %1265 = vsyncpa [#allocation4], 1 }
 0x818   :  { %1267 = vsyncpa [#allocation4 + $0x1], 1 }

</bundles_post_ra>
